<compile_context>
chip_gen: v5e
topology: v5e:2x2
jax: 0.10.0
libtpu: 0.0.40
codegen_flags: <defaults>
</compile_context>

<pallas_src>
import functools

import jax
import jax.numpy as jnp
from jax import lax
from jax.experimental import pallas as pl
from jax.experimental.pallas import tpu as pltpu

_LANES = 128


def _corruption_kernel(seed_ref, x_ref, o_ref, *, keep_threshold_24b):
    tile_rows, lanes = x_ref.shape
    row0 = pl.program_id(0) * tile_rows

    # Global flat element index of every element in this block (2-D iota).
    r = lax.broadcasted_iota(jnp.int32, (tile_rows, lanes), 0) + row0
    c = lax.broadcasted_iota(jnp.int32, (tile_rows, lanes), 1)
    idx = (r * lanes + c).astype(jnp.uint32)

    # Counter-based hash: mix the seed, then murmur3 fmix32 avalanche.
    seed = seed_ref[0].astype(jnp.uint32)
    h = (idx ^ seed) * jnp.uint32(0x9E3779B1)
    h = h ^ (h >> jnp.uint32(16))
    h = h * jnp.uint32(0x85EBCA6B)
    h = h ^ (h >> jnp.uint32(13))
    h = h * jnp.uint32(0xC2B2AE35)
    h = h ^ (h >> jnp.uint32(16))

    # Keep element iff its 24-bit uniform draw exceeds corrupt_p.
    # Pure integer threshold -- matches `uniform_() > p` up to 24-bit resolution.
    keep = (h >> jnp.uint32(8)) > jnp.uint32(keep_threshold_24b)

    x = x_ref[...]
    o_ref[...] = jnp.where(keep, x, jnp.zeros_like(x))


def corruption_layer(feature, seed, corrupt_p=0.1, *, max_tile_rows=1024):
    """Pallas equivalent of CorruptionLayer.forward.

    feature: float array of arbitrary shape (e.g. NCHW).
    seed:    python int / int32 scalar controlling the random bitmask.
             (PyTorch's uniform_() draws fresh randomness each call; here the
              caller controls it by varying `seed`.)
    """
    orig_shape = feature.shape
    dtype = feature.dtype
    total = feature.size

    # Lane-dense 2-D view.  Only pad when the flat size is not a multiple of
    # 128 -- padding + final slice each cost an extra HBM pass.
    if total % _LANES == 0:
        rows = total // _LANES
        x2d = feature.reshape(rows, _LANES)
        padded = False
    else:
        rows = pl.cdiv(total, _LANES)
        flat = jnp.pad(feature.reshape(-1), (0, rows * _LANES - total))
        x2d = flat.reshape(rows, _LANES)
        padded = True

    # Tile the rows axis: <= 1024 rows (512 KiB per f32 buffer) keeps the
    # double-buffered in+out well inside scoped VMEM on v5e/v6e/v7x while
    # still large enough to hit the HBM roofline.
    tile_rows = rows if rows <= max_tile_rows else max_tile_rows
    grid = (pl.cdiv(rows, tile_rows),)

    seed_arr = jnp.asarray([seed], dtype=jnp.int32)
    threshold = min(max(int(float(corrupt_p) * (1 << 24)), 0), (1 << 24) - 1)
    kernel = functools.partial(_corruption_kernel, keep_threshold_24b=threshold)

    out2d = pl.pallas_call(
        kernel,
        out_shape=jax.ShapeDtypeStruct((rows, _LANES), dtype),
        grid_spec=pltpu.PrefetchScalarGridSpec(
            num_scalar_prefetch=1,
            grid=grid,
            in_specs=[pl.BlockSpec((tile_rows, _LANES), lambda i, seed: (i, 0))],
            out_specs=pl.BlockSpec((tile_rows, _LANES), lambda i, seed: (i, 0)),
        ),
        compiler_params=pltpu.CompilerParams(
            dimension_semantics=("parallel",),
        ),
    )(seed_arr, x2d)

    if padded:
        return out2d.reshape(-1)[:total].reshape(orig_shape)
    return out2d.reshape(orig_shape)


if __name__ == "__main__":
    key = jax.random.PRNGKey(0)
    # Small NCHW feature map, consistent with a conv-style input.
    x = jax.random.normal(key, (2, 4, 16, 16), dtype=jnp.float32)

    out = corruption_layer(x, seed=1234, corrupt_p=0.1)
    out = jax.block_until_ready(out)

    # Sanity checks: every output element is either 0 or equal to the input,
    # and roughly (1 - p) of the elements are kept.
    kept = out != 0
    assert out.shape == x.shape
    assert bool(jnp.all(jnp.where(kept, out == x, out == 0)))
    keep_frac = float(jnp.mean(kept.astype(jnp.float32)))
    assert 0.75 < keep_frac < 1.0, keep_frac

    print("KERNEL_OK")
</pallas_src>

<mosaic_0001>
module attributes {stable_mosaic.version = 11 : i64} {
  func.func @_corruption_kernel(%arg0: i32, %arg1: memref<1xi32, #tpu.memory_space<smem>>, %arg2: memref<16x128xf32, #tpu.memory_space<vmem>>, %arg3: memref<16x128xf32, #tpu.memory_space<vmem>>) attributes {dimension_semantics = [#tpu.dimension_semantics<parallel>], iteration_bounds = array<i64: 1>, scalar_prefetch = 1 : i64, scratch_operands = 0 : i64, tpu.core_type = #tpu.core_type<tc>, window_params = [{transform_indices = @transform_0, window_bounds = array<i64: 16, 128>}, {transform_indices = @transform_1, window_bounds = array<i64: 16, 128>}]} {
    %c16_i32 = arith.constant 16 : i32
    %0 = arith.muli %arg0, %c16_i32 : i32
    %1 = tpu.iota {dimensions = array<i32: 0>} : vector<16x128xi32>
    %2 = vector.broadcast %0 : i32 to vector<16x128xi32>
    %3 = arith.addi %1, %2 : vector<16x128xi32>
    %4 = tpu.iota {dimensions = array<i32: 1>} : vector<16x128xi32>
    %c128_i32 = arith.constant 128 : i32
    %5 = vector.broadcast %c128_i32 : i32 to vector<16x128xi32>
    %6 = arith.muli %3, %5 : vector<16x128xi32>
    %7 = arith.addi %6, %4 : vector<16x128xi32>
    %c0 = arith.constant 0 : index
    %8 = memref.load %arg1[%c0] : memref<1xi32, #tpu.memory_space<smem>>
    %9 = vector.broadcast %8 : i32 to vector<16x128xi32>
    %10 = arith.xori %7, %9 : vector<16x128xi32>
    %c-1640531535_i32 = arith.constant -1640531535 : i32
    %11 = vector.broadcast %c-1640531535_i32 : i32 to vector<16x128xi32>
    %12 = arith.muli %10, %11 : vector<16x128xi32>
    %c16_i32_0 = arith.constant 16 : i32
    %13 = vector.broadcast %c16_i32_0 : i32 to vector<16x128xi32>
    %14 = arith.shrui %12, %13 : vector<16x128xi32>
    %15 = arith.xori %12, %14 : vector<16x128xi32>
    %c-2048144789_i32 = arith.constant -2048144789 : i32
    %16 = vector.broadcast %c-2048144789_i32 : i32 to vector<16x128xi32>
    %17 = arith.muli %15, %16 : vector<16x128xi32>
    %c13_i32 = arith.constant 13 : i32
    %18 = vector.broadcast %c13_i32 : i32 to vector<16x128xi32>
    %19 = arith.shrui %17, %18 : vector<16x128xi32>
    %20 = arith.xori %17, %19 : vector<16x128xi32>
    %c-1028477387_i32 = arith.constant -1028477387 : i32
    %21 = vector.broadcast %c-1028477387_i32 : i32 to vector<16x128xi32>
    %22 = arith.muli %20, %21 : vector<16x128xi32>
    %c16_i32_1 = arith.constant 16 : i32
    %23 = vector.broadcast %c16_i32_1 : i32 to vector<16x128xi32>
    %24 = arith.shrui %22, %23 : vector<16x128xi32>
    %25 = arith.xori %22, %24 : vector<16x128xi32>
    %c8_i32 = arith.constant 8 : i32
    %26 = vector.broadcast %c8_i32 : i32 to vector<16x128xi32>
    %27 = arith.shrui %25, %26 : vector<16x128xi32>
    %c1677721_i32 = arith.constant 1677721 : i32
    %28 = vector.broadcast %c1677721_i32 : i32 to vector<16x128xi32>
    %29 = arith.cmpi ugt, %27, %28 : vector<16x128xi32>
    %c0_2 = arith.constant 0 : index
    %c0_3 = arith.constant 0 : index
    %30 = vector.load %arg2[%c0_2, %c0_3] : memref<16x128xf32, #tpu.memory_space<vmem>>, vector<16x128xf32>
    %cst = arith.constant 0.000000e+00 : f32
    %31 = vector.broadcast %cst : f32 to vector<16x128xf32>
    %32 = arith.select %29, %30, %31 : vector<16x128xi1>, vector<16x128xf32>
    %c0_4 = arith.constant 0 : index
    %c0_5 = arith.constant 0 : index
    %33 = vector.load %arg3[%c0_4, %c0_5] : memref<16x128xf32, #tpu.memory_space<vmem>>, vector<16x128xf32>
    tpu.vector_store %arg3[%c0_4, %c0_5], %32 {strides = array<i32>} : memref<16x128xf32, #tpu.memory_space<vmem>>, vector<16x128xf32>,
    return
  }
  func.func @transform_0(%arg0: i32, %arg1: memref<1xi32, #tpu.memory_space<smem>>) -> (i32, i32) {
    %c0_i32 = arith.constant 0 : i32
    %c0_i32_0 = arith.constant 0 : i32
    return %arg0, %c0_i32 : i32, i32
  }
  func.func @transform_1(%arg0: i32, %arg1: memref<1xi32, #tpu.memory_space<smem>>) -> (i32, i32) {
    %c0_i32 = arith.constant 0 : i32
    %c0_i32_0 = arith.constant 0 : i32
    return %arg0, %c0_i32 : i32, i32
  }
}

</mosaic_0001>

<bundles_post_ra>
// kernel: tpu_custom_call.1
= control target key start
LH: loop header
LB: loop body
LE: loop exit
PB: predicated region body
PF: predicated region fallthrough
CT: control target
= control target key end

     0   :  { %8 = vsyncpa [#allocation5], 0  ;;  %s187_s0 = inlined_call_operand.<no memory space> [shape: s32[1], index: 0, kind: input, shape index: {}]   ;;  %s188_s1 = inlined_call_operand.hbm [shape: f32[16,128], index: 1, kind: input, shape index: {}]   ;;  %s189_s2 = inlined_call_operand.hbm [shape: f32[16,128], index: 2, kind: output, shape index: {}]  }
   0x1   :  { %9 = vsyncpa [#allocation6], 0  ;;  %s14_s11 = sshll.u32 %s188_s1, 4  ;;  %s153_s12 = smov [#allocation4]   ;;  %s15_s11 = int_to_ptr.hbm [resolvable:$true] %s14_s11 }
   0x2   :  { %s16_s13 = sshll.u32 %s153_s12, 4  ;;  %s154_s14 = smov 128   ;;  %s17_s13 = int_to_ptr.vmem [resolvable:$true] %s16_s13 }
   0x3   :  { %s155_s15 = smov 8  }
   0x4   :  { %22 = dma.hbm_to_vmem [thread:$0]  %s15_s11, 256, %s17_s13, [#allocation5], %s154_s14, %s154_s14, %s155_s15  }
   0x5   :  { %149 = dma.done.wait [#allocation5], 256  }
   0x6   :  { %150 = vsyncadd [#allocation5], 4294967040  ;;  %v28_v0 = vlaneseq  ;;  %v41_v5 = vstv %s187_s0  ;;  %v70_v31 = vld [vmem:[#allocation4] sm:$0xff]  ;;  %s156_s0 = smov [#allocation7]   ;;  %s82_s20 = sshll.u32 %s189_s2, 4  ;;  %v71_v34 = vld [vmem:[#allocation4 + $0x8] sm:$0xff]  ;;  %s83_s20 = int_to_ptr.hbm [resolvable:$true] %s82_s20 }
   0x7   :  { %s80_s1 = sshll.u32 %s156_s0, 4  ;;  %s81_s1 = int_to_ptr.vmem [resolvable:$true] %s80_s1 }
   0x8   :  { %v29_v1 = vshrl.u32 %v28_v0, 7  ;;  %v35_v2 = vand.u32 127, %v28_v0 }
   0xa   :  { %v36_v3 = vmul.u32 128, %v29_v1  ;;  %v30_v4 = vadd.s32 8, %v29_v1 }
   0xc   :  { %v38_v6 = vadd.s32 %v36_v3, %v35_v2  ;;  %v37_v7 = vmul.u32 128, %v30_v4 }
   0xe   :  { %v42_v8 = vxor.u32 %v41_v5, %v38_v6  ;;  %v39_v9 = vadd.s32 %v37_v7, %v35_v2 }
  0x10   :  { %v44_v10 = vmul.u32 2654435761, %v42_v8  ;;  %v43_v11 = vxor.u32 %v41_v5, %v39_v9 }
  0x12   :  { %v46_v12 = vshrl.u32 %v44_v10, 16  ;;  %v45_v13 = vmul.u32 2654435761, %v43_v11 }
  0x14   :  { %v48_v14 = vxor.u32 %v46_v12, %v44_v10  ;;  %v47_v15 = vshrl.u32 %v45_v13, 16 }
  0x16   :  { %v50_v16 = vmul.u32 2246822507, %v48_v14  ;;  %v49_v17 = vxor.u32 %v47_v15, %v45_v13 }
  0x18   :  { %v52_v18 = vshrl.u32 %v50_v16, 13  ;;  %v51_v19 = vmul.u32 2246822507, %v49_v17 }
  0x1a   :  { %v54_v20 = vxor.u32 %v52_v18, %v50_v16  ;;  %v53_v21 = vshrl.u32 %v51_v19, 13 }
  0x1c   :  { %v56_v22 = vmul.u32 3266489909, %v54_v20  ;;  %v55_v23 = vxor.u32 %v53_v21, %v51_v19 }
  0x1e   :  { %v58_v24 = vshrl.u32 %v56_v22, 16  ;;  %v57_v25 = vmul.u32 3266489909, %v55_v23 }
  0x20   :  { %v60_v26 = vxor.u32 %v58_v24, %v56_v22  ;;  %v59_v27 = vshrl.u32 %v57_v25, 16 }
  0x22   :  { %v62_v28 = vshrl.u32 %v60_v26, 8  ;;  %v61_v29 = vxor.u32 %v59_v27, %v57_v25 }
  0x24   :  { %v95_v30 = vxor.u32 2147483648, %v62_v28  ;;  %v63_v32 = vshrl.u32 %v61_v29, 8 }
  0x26   :  { %vm66_vm0 = vcmp.gt.s32.totalorder %v95_v30, 2149161369  ;;  %v96_v33 = vxor.u32 2147483648, %v63_v32 }
  0x27   :  { %v72_v35 = vsel %vm66_vm0, %v70_v31, 0.0 }
  0x28   :  { %74 = vst [vmem:[#allocation7] sm:$0xff] %v72_v35  ;;  %vm69_vm1 = vcmp.gt.s32.totalorder %v96_v33, 2149161369 }
  0x29   :  { %v73_v36 = vsel %vm69_vm1, %v71_v34, 0.0 }
  0x2a   :  { %75 = vst [vmem:[#allocation7 + $0x8] sm:$0xff] %v73_v36 }
  0x2b   :  { %88 = dma.vmem_to_hbm [thread:$0]  %s81_s1, 256, %s83_s20, [#allocation6], %s154_s14, %s154_s14, %s155_s15  }
  0x2c   :  { %151 = dma.done.wait [#allocation6], 256  }
  0x2d   :  { %152 = vsyncadd [#allocation6], 4294967040 }
  0x2e   :  { %93 = vsyncpa [#allocation5], 1 }
  0x2f   :  { %94 = vsyncpa [#allocation6], 1 }

</bundles_post_ra>
